<compile_context>
chip_gen: v6e
topology: v6e:2x2x1
jax: 0.10.0
libtpu: 0.0.40
codegen_flags: <defaults>
</compile_context>

<pallas_src>
import jax
import jax.numpy as jnp
from jax.experimental import pallas as pl
from jax.experimental.pallas import tpu as pltpu


SUBLANE = 8        # batch tiles are multiples of this
MAX_TB = 1024      # batch-tile cap (kernel is overhead/HBM bound, not VMEM bound)


# ----------------------------------------------------------------------------
# Pallas kernel: fused (pre-folded) MLP forward:  relu(x @ W1' + b1') @ W2 + b2
# ----------------------------------------------------------------------------
def actor_kernel(state_ref, w1_ref, b1_ref, w2_ref, b2_ref, out_ref):
    x = state_ref[...]

    # fc1_1 (running-mean/std folded in) + ReLU.  MXU, f32 accumulate.
    h = jnp.dot(x, w1_ref[...], preferred_element_type=jnp.float32) + b1_ref[...]
    h = jnp.maximum(h, 0.0)

    # mean_linear (logits), compact [TB, action_dim] store.
    q = jnp.dot(h, w2_ref[...], preferred_element_type=jnp.float32) + b2_ref[...]
    out_ref[...] = q.astype(out_ref.dtype)


def _round_up(x, m):
    return (x + m - 1) // m * m


@jax.jit
def actor_forward(state, w1f, b1f, w2, b2):
    """state: [B, S] f32; folded params from fold_actor_params.

    Returns logits [B, action_dim] f32 (exact shape, no post-slice needed).
    """
    B, S = state.shape
    H = w1f.shape[1]
    A = w2.shape[1]

    # Batch tile: multiple of 8 sublanes, capped at MAX_TB; for larger batches
    # keep at least 2 grid steps so v7x's two TensorCores both get work.
    TB = min(MAX_TB, _round_up(B, SUBLANE))
    if B > 2 * SUBLANE:
        TB = min(TB, _round_up(pl.cdiv(B, 2), SUBLANE))
    grid = (pl.cdiv(B, TB),)

    return pl.pallas_call(
        actor_kernel,
        out_shape=jax.ShapeDtypeStruct((B, A), jnp.float32),
        grid=grid,
        in_specs=[
            pl.BlockSpec((TB, S), lambda i: (i, 0)),   # state tile (ragged last block masked)
            pl.BlockSpec((S, H), lambda i: (0, 0)),    # W1 (folded), VMEM-resident
            pl.BlockSpec((1, H), lambda i: (0, 0)),    # b1 (folded), resident
            pl.BlockSpec((H, A), lambda i: (0, 0)),    # W2 (compact), resident
            pl.BlockSpec((1, A), lambda i: (0, 0)),    # b2 (compact), resident
        ],
        out_specs=pl.BlockSpec((TB, A), lambda i: (i, 0)),
        compiler_params=pltpu.CompilerParams(
            dimension_semantics=("parallel",),         # batch axis shards across TCs
        ),
    )(state, w1f, b1f, w2, b2)


# ----------------------------------------------------------------------------
# One-time parameter folding (redo whenever RunningMeanStd statistics update).
# ----------------------------------------------------------------------------
def fold_actor_params(p, eps=1e-8):
    """Fold RunningMeanStd into fc1_1; keep mean_linear compact.

    TODO(synk): eps must match the reference RunningMeanStd epsilon, and this
    fold must be re-run after every running-statistics update in PPO.
    """
    inv_std = 1.0 / jnp.sqrt(p["rms_var"] + eps)                       # [S]
    w1f = inv_std[:, None] * p["w1_t"]                                 # [S, H]
    b1f = p["b1"] - jnp.sum((p["rms_mean"] * inv_std)[:, None] * p["w1_t"], axis=0)

    return dict(
        w1f=w1f.astype(jnp.float32),
        b1f=b1f.reshape(1, -1).astype(jnp.float32),
        w2=p["w2_t"].astype(jnp.float32),
        b2=p["b2"].reshape(1, -1).astype(jnp.float32),
    )


# ----------------------------------------------------------------------------
# Deterministic parameter construction (mirrors _initialize_weights()).
# ----------------------------------------------------------------------------
def orthogonal_(key, rows, cols, gain):
    """Orthogonal init a la nn.init.orthogonal_ for a (rows, cols) matrix."""
    flat = jax.random.normal(key, (max(rows, cols), min(rows, cols)), jnp.float32)
    q, r = jnp.linalg.qr(flat)
    q = q * jnp.sign(jnp.diagonal(r))[None, :]
    if rows < cols:
        q = q.T
    return gain * q[:rows, :cols]


def make_actor_params(key, state_dim, action_dim, hidden=512):
    k1, k2 = jax.random.split(key)
    relu_gain = float(jnp.sqrt(2.0))            # nn.init.calculate_gain('relu')
    # PyTorch Linear weights are (out, in); build them, then transpose for the kernel.
    w1 = orthogonal_(k1, hidden, state_dim, relu_gain)      # fc1_1.weight
    w2 = orthogonal_(k2, action_dim, hidden, 0.01)          # mean_linear.weight
    b1 = jnp.zeros((hidden,), jnp.float32)
    b2 = jnp.zeros((action_dim,), jnp.float32)
    # RunningMeanStd initial statistics (mean=0, var=1); perturb slightly so the
    # normalization fold is actually exercised.
    kmu, kvar = jax.random.split(jax.random.fold_in(key, 7))
    rms_mean = 0.1 * jax.random.normal(kmu, (state_dim,), jnp.float32)
    rms_var = 1.0 + 0.1 * jax.random.uniform(kvar, (state_dim,), jnp.float32)
    return dict(w1_t=w1.T, b1=b1, w2_t=w2.T, b2=b2,
                rms_mean=rms_mean, rms_var=rms_var)


# ----------------------------------------------------------------------------
# Pure-JAX reference (un-folded, matches the PyTorch forward).
# ----------------------------------------------------------------------------
def actor_forward_ref(state, p, eps=1e-8):
    hi = jax.lax.Precision.HIGHEST
    x = (state - p["rms_mean"]) / jnp.sqrt(p["rms_var"] + eps)
    h = jnp.maximum(jnp.dot(x, p["w1_t"], precision=hi) + p["b1"], 0.0)
    return jnp.dot(h, p["w2_t"], precision=hi) + p["b2"]


if __name__ == "__main__":
    # LunarLander-like sizes: state_dim=8, action_dim=4, hidden=512.
    STATE_DIM, ACTION_DIM, HIDDEN = 8, 4, 512

    key = jax.random.PRNGKey(0)
    kp, kx1, kx2 = jax.random.split(key, 3)
    params = make_actor_params(kp, STATE_DIM, ACTION_DIM, HIDDEN)
    folded = fold_actor_params(params)

    # Small batch (single grid step, TB > B exercises ragged masking).
    state_small = jax.random.normal(kx1, (8, STATE_DIM), jnp.float32)
    logits_small = actor_forward(state_small, folded["w1f"], folded["b1f"],
                                 folded["w2"], folded["b2"])
    logits_small = jax.block_until_ready(logits_small)
    ref_small = actor_forward_ref(state_small, params)
    assert logits_small.shape == (8, ACTION_DIM)
    assert jnp.allclose(logits_small, ref_small, atol=1e-3, rtol=1e-3), \
        "small-batch mismatch vs reference"

    # Non-multiple-of-tile batch (exercises >=2 grid steps + masked last block).
    state_big = jax.random.normal(kx2, (37, STATE_DIM), jnp.float32)
    logits_big = actor_forward(state_big, folded["w1f"], folded["b1f"],
                               folded["w2"], folded["b2"])
    logits_big = jax.block_until_ready(logits_big)
    ref_big = actor_forward_ref(state_big, params)
    assert logits_big.shape == (37, ACTION_DIM)
    assert jnp.allclose(logits_big, ref_big, atol=1e-3, rtol=1e-3), \
        "batched mismatch vs reference"

    print("KERNEL_OK")
</pallas_src>

<mosaic_0001>
module attributes {stable_mosaic.version = 11 : i64} {
  func.func @actor_kernel(%arg0: i32, %arg1: memref<8x8xf32, #tpu.memory_space<vmem>>, %arg2: memref<8x512xf32, #tpu.memory_space<vmem>>, %arg3: memref<1x512xf32, #tpu.memory_space<vmem>>, %arg4: memref<512x4xf32, #tpu.memory_space<vmem>>, %arg5: memref<1x4xf32, #tpu.memory_space<vmem>>, %arg6: memref<8x4xf32, #tpu.memory_space<vmem>>) attributes {dimension_semantics = [#tpu.dimension_semantics<parallel>], iteration_bounds = array<i64: 1>, scalar_prefetch = 0 : i64, scratch_operands = 0 : i64, tpu.core_type = #tpu.core_type<tc>, window_params = [{transform_indices = @transform_0, window_bounds = array<i64: 8, 8>}, {pipeline_mode = #tpu.pipeline_mode<synchronous>, transform_indices = @transform_1, window_bounds = array<i64: 8, 512>}, {pipeline_mode = #tpu.pipeline_mode<synchronous>, transform_indices = @transform_2, window_bounds = array<i64: 1, 512>}, {pipeline_mode = #tpu.pipeline_mode<synchronous>, transform_indices = @transform_3, window_bounds = array<i64: 512, 4>}, {pipeline_mode = #tpu.pipeline_mode<synchronous>, transform_indices = @transform_4, window_bounds = array<i64: 1, 4>}, {transform_indices = @transform_5, window_bounds = array<i64: 8, 4>}]} {
    %c0 = arith.constant 0 : index
    %c0_0 = arith.constant 0 : index
    %0 = vector.load %arg1[%c0, %c0_0] : memref<8x8xf32, #tpu.memory_space<vmem>>, vector<8x8xf32>
    %c0_1 = arith.constant 0 : index
    %c0_2 = arith.constant 0 : index
    %1 = vector.load %arg2[%c0_1, %c0_2] : memref<8x512xf32, #tpu.memory_space<vmem>>, vector<8x512xf32>
    %cst = arith.constant dense<0.000000e+00> : vector<8x512xf32>
    %2 = tpu.matmul %0, %1, %cst {dimension_numbers = #tpu.dot_dimension_numbers<[1], [0], [0], [1], [0, 0, 1, 1], [], []>} : vector<8x8xf32>, vector<8x512xf32>, vector<8x512xf32> -> vector<8x512xf32>
    %c0_3 = arith.constant 0 : index
    %c0_4 = arith.constant 0 : index
    %3 = vector.load %arg3[%c0_3, %c0_4] : memref<1x512xf32, #tpu.memory_space<vmem>>, vector<1x512xf32>
    %4 = vector.broadcast %3 : vector<1x512xf32> to vector<8x512xf32>
    %5 = arith.addf %2, %4 : vector<8x512xf32>
    %cst_5 = arith.constant 0.000000e+00 : f32
    %6 = vector.broadcast %cst_5 : f32 to vector<8x512xf32>
    %7 = arith.maximumf %5, %6 : vector<8x512xf32>
    %c0_6 = arith.constant 0 : index
    %c0_7 = arith.constant 0 : index
    %8 = vector.load %arg4[%c0_6, %c0_7] : memref<512x4xf32, #tpu.memory_space<vmem>>, vector<512x4xf32>
    %cst_8 = arith.constant dense<0.000000e+00> : vector<8x4xf32>
    %9 = tpu.matmul %7, %8, %cst_8 {dimension_numbers = #tpu.dot_dimension_numbers<[1], [0], [0], [1], [0, 0, 1, 1], [], []>} : vector<8x512xf32>, vector<512x4xf32>, vector<8x4xf32> -> vector<8x4xf32>
    %c0_9 = arith.constant 0 : index
    %c0_10 = arith.constant 0 : index
    %10 = vector.load %arg5[%c0_9, %c0_10] : memref<1x4xf32, #tpu.memory_space<vmem>>, vector<1x4xf32>
    %11 = vector.broadcast %10 : vector<1x4xf32> to vector<8x4xf32>
    %12 = arith.addf %9, %11 : vector<8x4xf32>
    %c0_11 = arith.constant 0 : index
    %c0_12 = arith.constant 0 : index
    %13 = vector.load %arg6[%c0_11, %c0_12] : memref<8x4xf32, #tpu.memory_space<vmem>>, vector<8x4xf32>
    tpu.vector_store %arg6[%c0_11, %c0_12], %12 {strides = array<i32>} : memref<8x4xf32, #tpu.memory_space<vmem>>, vector<8x4xf32>,
    return
  }
  func.func @transform_0(%arg0: i32) -> (i32, i32) {
    %c0_i32 = arith.constant 0 : i32
    %c0_i32_0 = arith.constant 0 : i32
    return %arg0, %c0_i32 : i32, i32
  }
  func.func @transform_1(%arg0: i32) -> (i32, i32) {
    %c0_i32 = arith.constant 0 : i32
    %c0_i32_0 = arith.constant 0 : i32
    %c0_i32_1 = arith.constant 0 : i32
    return %c0_i32, %c0_i32_0 : i32, i32
  }
  func.func @transform_2(%arg0: i32) -> (i32, i32) {
    %c0_i32 = arith.constant 0 : i32
    %c0_i32_0 = arith.constant 0 : i32
    %c0_i32_1 = arith.constant 0 : i32
    return %c0_i32, %c0_i32_0 : i32, i32
  }
  func.func @transform_3(%arg0: i32) -> (i32, i32) {
    %c0_i32 = arith.constant 0 : i32
    %c0_i32_0 = arith.constant 0 : i32
    %c0_i32_1 = arith.constant 0 : i32
    return %c0_i32, %c0_i32_0 : i32, i32
  }
  func.func @transform_4(%arg0: i32) -> (i32, i32) {
    %c0_i32 = arith.constant 0 : i32
    %c0_i32_0 = arith.constant 0 : i32
    %c0_i32_1 = arith.constant 0 : i32
    return %c0_i32, %c0_i32_0 : i32, i32
  }
  func.func @transform_5(%arg0: i32) -> (i32, i32) {
    %c0_i32 = arith.constant 0 : i32
    %c0_i32_0 = arith.constant 0 : i32
    return %arg0, %c0_i32 : i32, i32
  }
}

</mosaic_0001>

<bundles_post_ra>
// kernel: actor_forward.1
= control target key start
LH: loop header
LB: loop body
LE: loop exit
PB: predicated region body
PF: predicated region fallthrough
CT: control target
= control target key end

     0   :  { %v488_v3 = vmov 0.0   ;;  %vm47_vm0 = vcmask 64512   ;;  %vm408_vm1 = vcmask 31744   ;;  %s735_s1 = inlined_call_operand.vmem [shape: f32[8,512], index: 1, kind: input, shape index: {}]   ;;  %s736_s0 = inlined_call_operand.vmem [shape: f32[8,8], index: 0, kind: input, shape index: {}]   ;;  %s737_s3 = inlined_call_operand.vmem [shape: f32[512,4], index: 3, kind: input, shape index: {}]   ;;  %s738_s2 = inlined_call_operand.vmem [shape: f32[1,512], index: 2, kind: input, shape index: {}]   ;;  %s739_s4 = inlined_call_operand.vmem [shape: f32[1,4], index: 4, kind: input, shape index: {}]   ;;  %s740_s5 = inlined_call_operand.vmem [shape: f32[8,4], index: 5, kind: output, shape index: {}]  }
   0x1   :  { %v22_v0 = vld [vmem:[%s735_s1 + $0x8] sm:$0xff]  ;;  %v24_v1 = vld [vmem:[%s735_s1 + $0x18] sm:$0xff]  ;;  %v21_v2 = vld [vmem:[%s735_s1] sm:$0xff]  ;;  %115 = vmatprep.mubr.f32.mxu0 %v488_v3  ;;  %186 = vmatprep.mubr.f32.mxu1 %v488_v3 }
   0x2   :  { %81 = vmatprep.subr.mxu0 %v22_v0  ;;  %152 = vmatprep.subr.mxu1 %v24_v1  ;;  %v23_v4 = vld [vmem:[%s735_s1 + $0x10] sm:$0xff]  ;;  %v20_v5 = vld [vmem:[%s736_s0] sm:$0xff]  ;;  %v228_v6 = vld [vmem:[%s737_s3 + $0xf8] sm:$0xff] }
   0x3   :  { %82 = vmatpush1.msra.mxu0 %v21_v2  ;;  %153 = vmatpush1.msra.mxu1 %v23_v4  ;;  %v260_v7 = vld [vmem:[%s737_s3 + $0x1f8] sm:$0xff]  ;;  %v227_v10 = vld [vmem:[%s737_s3 + $0xf0] sm:$0xff]  ;;  %v226_v14 = vld [vmem:[%s737_s3 + $0xe8] sm:$0xff] }
   0x4   :  { %v212_v8 = vld [vmem:[%s737_s3 + $0x78] sm:$0xff]  ;;  %414 = vmatmul.mubr.msk.f32.vlgmr.msra.gmra.mxu0 %vm47_vm0, %v20_v5  ;;  %415 = vmatmul.mubr.msk.f32.vlgmr.msra.gmra.mxu1 %vm47_vm0, %v20_v5  ;;  %v259_v11 = vld [vmem:[%s737_s3 + $0x1f0] sm:$0xff]  ;;  %v258_v15 = vld [vmem:[%s737_s3 + $0x1e8] sm:$0xff] }
   0x5   :  { %v244_v9 = vld [vmem:[%s737_s3 + $0x178] sm:$0xff]  ;;  %417 = vmatprep.subr.mxu0 %v228_v6  ;;  %452 = vmatprep.subr.mxu1 %v260_v7  ;;  %v211_v12 = vld [vmem:[%s737_s3 + $0x70] sm:$0xff]  ;;  %v210_v16 = vld [vmem:[%s737_s3 + $0x68] sm:$0xff]  ;;  %v27_v6 = vlaneseq }
   0x6   :  { %v243_v13 = vld [vmem:[%s737_s3 + $0x170] sm:$0xff]  ;;  %418 = vmatpush3.msra.mxu0 %v212_v8  ;;  %453 = vmatpush3.msra.mxu1 %v244_v9  ;;  %v242_v17 = vld [vmem:[%s737_s3 + $0x168] sm:$0xff]  ;;  %v225_v18 = vld [vmem:[%s737_s3 + $0xe0] sm:$0xff] }
   0x7   :  { %419 = vmatprep.subr.mxu0 %v227_v10  ;;  %454 = vmatprep.subr.mxu1 %v259_v11  ;;  %v257_v19 = vld [vmem:[%s737_s3 + $0x1e0] sm:$0xff]  ;;  %v224_v22 = vld [vmem:[%s737_s3 + $0xd8] sm:$0xff]  ;;  %v223_v26 = vld [vmem:[%s737_s3 + $0xd0] sm:$0xff]  ;;  %v28_v7 = vshrl.u32 %v27_v6, 7 }
   0x8   :  { %420 = vmatpush3.msra.mxu0 %v211_v12  ;;  %455 = vmatpush3.msra.mxu1 %v243_v13  ;;  %v209_v20 = vld [vmem:[%s737_s3 + $0x60] sm:$0xff]  ;;  %v256_v23 = vld [vmem:[%s737_s3 + $0x1d8] sm:$0xff]  ;;  %v255_v27 = vld [vmem:[%s737_s3 + $0x1d0] sm:$0xff] }
   0x9   :  { %421 = vmatprep.subr.mxu0 %v226_v14  ;;  %456 = vmatprep.subr.mxu1 %v258_v15  ;;  %v241_v21 = vld [vmem:[%s737_s3 + $0x160] sm:$0xff]  ;;  %v208_v24 = vld [vmem:[%s737_s3 + $0x58] sm:$0xff]  ;;  %v207_v28 = vld [vmem:[%s737_s3 + $0x50] sm:$0xff]  ;;  %v37_v8 = vsub.s32 2, %v28_v7  ;;  %v29_v9 = vsub.s32 0, %v28_v7  ;;  %v33_v11 = vsub.s32 1, %v28_v7 }
   0xa   :  { %422 = vmatpush3.msra.mxu0 %v210_v16  ;;  %457 = vmatpush3.msra.mxu1 %v242_v17  ;;  %v240_v25 = vld [vmem:[%s737_s3 + $0x158] sm:$0xff]  ;;  %v239_v29 = vld [vmem:[%s737_s3 + $0x150] sm:$0xff]  ;;  %v222_v30 = vld [vmem:[%s737_s3 + $0xc8] sm:$0xff]  ;;  %v41_v12 = vsub.s32 3, %v28_v7 }
   0xb   :  { %423 = vmatprep.subr.mxu0 %v225_v18  ;;  %458 = vmatprep.subr.mxu1 %v257_v19  ;;  %v254_v31 = vld [vmem:[%s737_s3 + $0x1c8] sm:$0xff]  ;;  %v221_v34 = vld [vmem:[%s737_s3 + $0xc0] sm:$0xff]  ;;  %v220_v38 = vld [vmem:[%s737_s3 + $0xb8] sm:$0xff] }
   0xc   :  { %424 = vmatpush3.msra.mxu0 %v209_v20  ;;  %459 = vmatpush3.msra.mxu1 %v241_v21  ;;  %v206_v32 = vld [vmem:[%s737_s3 + $0x48] sm:$0xff]  ;;  %v253_v35 = vld [vmem:[%s737_s3 + $0x1c0] sm:$0xff]  ;;  %v252_v39 = vld [vmem:[%s737_s3 + $0x1b8] sm:$0xff] }
   0xd   :  { %425 = vmatprep.subr.mxu0 %v224_v22  ;;  %460 = vmatprep.subr.mxu1 %v256_v23  ;;  %v238_v33 = vld [vmem:[%s737_s3 + $0x148] sm:$0xff]  ;;  %v205_v36 = vld [vmem:[%s737_s3 + $0x40] sm:$0xff]  ;;  %v204_v40 = vld [vmem:[%s737_s3 + $0x38] sm:$0xff] }
   0xe   :  { %426 = vmatpush3.msra.mxu0 %v208_v24  ;;  %461 = vmatpush3.msra.mxu1 %v240_v25  ;;  %v237_v37 = vld [vmem:[%s737_s3 + $0x140] sm:$0xff]  ;;  %v236_v41 = vld [vmem:[%s737_s3 + $0x138] sm:$0xff]  ;;  %v219_v42 = vld [vmem:[%s737_s3 + $0xb0] sm:$0xff] }
   0xf   :  { %427 = vmatprep.subr.mxu0 %v223_v26  ;;  %462 = vmatprep.subr.mxu1 %v255_v27  ;;  %v251_v43 = vld [vmem:[%s737_s3 + $0x1b0] sm:$0xff]  ;;  %v218_v46 = vld [vmem:[%s737_s3 + $0xa8] sm:$0xff]  ;;  %v217_v50 = vld [vmem:[%s737_s3 + $0xa0] sm:$0xff] }
  0x10   :  { %428 = vmatpush3.msra.mxu0 %v207_v28  ;;  %463 = vmatpush3.msra.mxu1 %v239_v29  ;;  %v203_v44 = vld [vmem:[%s737_s3 + $0x30] sm:$0xff]  ;;  %v250_v47 = vld [vmem:[%s737_s3 + $0x1a8] sm:$0xff]  ;;  %v249_v51 = vld [vmem:[%s737_s3 + $0x1a0] sm:$0xff] }
  0x11   :  { %429 = vmatprep.subr.mxu0 %v222_v30  ;;  %464 = vmatprep.subr.mxu1 %v254_v31  ;;  %v235_v45 = vld [vmem:[%s737_s3 + $0x130] sm:$0xff]  ;;  %v202_v48 = vld [vmem:[%s737_s3 + $0x28] sm:$0xff]  ;;  %v201_v52 = vld [vmem:[%s737_s3 + $0x20] sm:$0xff] }
  0x12   :  { %430 = vmatpush3.msra.mxu0 %v206_v32  ;;  %465 = vmatpush3.msra.mxu1 %v238_v33  ;;  %v234_v49 = vld [vmem:[%s737_s3 + $0x128] sm:$0xff]  ;;  %v233_v53 = vld [vmem:[%s737_s3 + $0x120] sm:$0xff]  ;;  %v216_v54 = vld [vmem:[%s737_s3 + $0x98] sm:$0xff] }
  0x13   :  { %431 = vmatprep.subr.mxu0 %v221_v34  ;;  %466 = vmatprep.subr.mxu1 %v253_v35  ;;  %v248_v55 = vld [vmem:[%s737_s3 + $0x198] sm:$0xff]  ;;  %v215_v58 = vld [vmem:[%s737_s3 + $0x90] sm:$0xff]  ;;  %v214_v62 = vld [vmem:[%s737_s3 + $0x88] sm:$0xff] }
  0x14   :  { %432 = vmatpush3.msra.mxu0 %v205_v36  ;;  %467 = vmatpush3.msra.mxu1 %v237_v37  ;;  %v200_v56 = vld [vmem:[%s737_s3 + $0x18] sm:$0xff]  ;;  %v247_v59 = vld [vmem:[%s737_s3 + $0x190] sm:$0xff]  ;;  %v246_v63 = vld [vmem:[%s737_s3 + $0x188] sm:$0xff] }
  0x15   :  { %433 = vmatprep.subr.mxu0 %v220_v38  ;;  %468 = vmatprep.subr.mxu1 %v252_v39  ;;  %v232_v57 = vld [vmem:[%s737_s3 + $0x118] sm:$0xff]  ;;  %v199_v60 = vld [vmem:[%s737_s3 + $0x10] sm:$0xff]  ;;  %v198_v0 = vld [vmem:[%s737_s3 + $0x8] sm:$0xff] }
  0x16   :  { %434 = vmatpush3.msra.mxu0 %v204_v40  ;;  %469 = vmatpush3.msra.mxu1 %v236_v41  ;;  %v231_v61 = vld [vmem:[%s737_s3 + $0x110] sm:$0xff]  ;;  %v230_v1 = vld [vmem:[%s737_s3 + $0x108] sm:$0xff]  ;;  %v213_v2 = vld [vmem:[%s737_s3 + $0x80] sm:$0xff] }
  0x17   :  { %435 = vmatprep.subr.mxu0 %v219_v42  ;;  %470 = vmatprep.subr.mxu1 %v251_v43  ;;  %v245_v3 = vld [vmem:[%s737_s3 + $0x180] sm:$0xff] }
  0x18   :  { %436 = vmatpush3.msra.mxu0 %v203_v44  ;;  %471 = vmatpush3.msra.mxu1 %v235_v45  ;;  %v197_v4 = vld [vmem:[%s737_s3] sm:$0xff] }
  0x19   :  { %437 = vmatprep.subr.mxu0 %v218_v46  ;;  %472 = vmatprep.subr.mxu1 %v250_v47  ;;  %v229_v5 = vld [vmem:[%s737_s3 + $0x100] sm:$0xff] }
  0x1a   :  { %438 = vmatpush3.msra.mxu0 %v202_v48  ;;  %473 = vmatpush3.msra.mxu1 %v234_v49  ;;  %v25_v10 = vld [vmem:[%s738_s2] sm:$0xf] }
  0x1b   :  { %439 = vmatprep.subr.mxu0 %v217_v50  ;;  %474 = vmatprep.subr.mxu1 %v249_v51  ;;  %v38_v13 = vrot.slane %v25_v10, %v37_v8  ;;  %v30_v14 = vrot.slane %v25_v10, %v29_v9  ;;  %v34_v15 = vrot.slane %v25_v10, %v33_v11  ;;  %v416_v31 = vld [vmem:[%s739_s4] ss:$0 sm:$0xff] }
  0x1c   :  { %440 = vmatpush3.msra.mxu0 %v201_v52  ;;  %475 = vmatpush3.msra.mxu1 %v233_v53  ;;  %v42_v16 = vrot.slane %v25_v10, %v41_v12 }
  0x1d   :  { %441 = vmatprep.subr.mxu0 %v216_v54  ;;  %476 = vmatprep.subr.mxu1 %v248_v55 }
  0x1e   :  { %442 = vmatpush3.msra.mxu0 %v200_v56  ;;  %477 = vmatpush3.msra.mxu1 %v232_v57 }
  0x1f   :  { %443 = vmatprep.subr.mxu0 %v215_v58  ;;  %478 = vmatprep.subr.mxu1 %v247_v59 }
  0x20   :  { %444 = vmatpush3.msra.mxu0 %v199_v60  ;;  %479 = vmatpush3.msra.mxu1 %v231_v61 }
  0x21   :  { %445 = vmatprep.subr.mxu0 %v214_v62  ;;  %480 = vmatprep.subr.mxu1 %v246_v63 }
  0x22   :  { %446 = vmatpush3.msra.mxu0 %v198_v0  ;;  %481 = vmatpush3.msra.mxu1 %v230_v1 }
  0x23   :  { %447 = vmatprep.subr.mxu0 %v213_v2  ;;  %482 = vmatprep.subr.mxu1 %v245_v3 }
  0x24   :  { %448 = vmatpush3.msra.mxu0 %v197_v4  ;;  %483 = vmatpush3.msra.mxu1 %v229_v5 }
  0xc4   :  { %v117_v17 = vpop.f32.mrf.mxu0  ;;  %v188_v18 = vpop.f32.mrf.mxu1 }
  0xc5   :  { %v189_v19 = vadd.f32 %v188_v18, %v38_v13  ;;  %v118_v20 = vadd.f32 %v117_v17, %v30_v14 }
  0xc6   :  { %v119_v21 = vpop.f32.mrf.mxu0  ;;  %v190_v22 = vpop.f32.mrf.mxu1 }
  0xc7   :  { %v120_v23 = vadd.f32 %v119_v21, %v34_v15  ;;  %v191_v24 = vadd.f32 %v190_v22, %v42_v16  ;;  %v195_v25 = vmax.f32 %v189_v19, 0.0  ;;  %v193_v28 = vmax.f32 %v118_v20, 0.0 }
  0xc9   :  { %v194_v26 = vmax.f32 %v120_v23, 0.0  ;;  %v196_v27 = vmax.f32 %v191_v24, 0.0 }
  0xcb   :  { %332 = vmatprep.mubr.f32.mxu0 %v194_v26  ;;  %402 = vmatprep.mubr.f32.mxu1 %v196_v27 }
  0xcc   :  { %333 = vmatmul.mubr.f32.vlgmr.msra.gmra.mxu0 %v193_v28  ;;  %403 = vmatmul.mubr.f32.vlgmr.msra.gmra.mxu1 %v195_v25 }
 0x18c   :  { %v449_v29 = vpop.f32.mrf.mxu0  ;;  %v484_v30 = vpop.f32.mrf.mxu1 }
 0x18e   :  { %v450_v32 = vpop.f32.mrf.mxu0  ;;  %v485_v33 = vpop.f32.mrf.mxu1 }
 0x18f   :  { %v451_v34 = vadd.f32 %v450_v32, %v449_v29  ;;  %v486_v36 = vadd.f32 %v485_v33, %v484_v30 }
 0x191   :  { %v335_v35 = vadd.f32 %v451_v34, %v416_v31 }
 0x193   :  { %v405_v37 = vadd.f32 %v486_v36, %v335_v35 }
 0x195   :  { %409 = vst.msk [vmem:[%s740_s5] sm:$0xff] %vm408_vm1, %v405_v37 }

</bundles_post_ra>
